<compile_context>
chip_gen: v5e
topology: v5e:2x2
jax: 0.10.0
libtpu: 0.0.40
codegen_flags: <defaults>
</compile_context>

<pallas_src>
import jax
import jax.numpy as jnp
import numpy as np
from jax.experimental import pallas as pl
from jax.experimental.pallas import tpu as pltpu


def _round_up(x, m):
    return ((x + m - 1) // m) * m


def decoder_kernel(z_ref, w_init_ref, w1s_ref, w1z_ref, b1_ref, w2_ref, b2_ref,
                   wq_ref, dt_ref, sol_ref, mu_ref):
    TB = z_ref.shape[0]          # batch rows handled by this program (mult. of 8)
    T = dt_ref.shape[0]          # number of time steps (static)
    S = w_init_ref.shape[1]      # ODE state dim

    z = z_ref[...]                                                           # (TB, L)
    # Initial ODE state from the latent.
    state = jnp.dot(z, w_init_ref[...], preferred_element_type=jnp.float32)  # (TB, S)
    # z contribution + hidden bias are time-invariant -> hoist out of the loop.
    z_bias = (jnp.dot(z, w1z_ref[...], preferred_element_type=jnp.float32)
              + b1_ref[...])                                                 # (TB, H)
    b2 = jnp.broadcast_to(b2_ref[...], (TB, S))                              # hoisted broadcast
    w1s = w1s_ref[...]                                                       # (S, H)
    w2 = w2_ref[...]                                                         # (H, S)

    # Explicit Euler, fully unrolled (T is tiny and static).  Each step's state
    # is stored immediately (sublane-aligned: TB % 8 == 0), so only the current
    # state stays live in vregs.  Time-major rows: [t*TB : (t+1)*TB) = step t.
    sol_ref[pl.ds(0, TB), :] = state
    for t in range(1, T):
        h = jnp.tanh(jnp.dot(state, w1s, preferred_element_type=jnp.float32)
                     + z_bias)                                               # (TB, H)
        dstate = jnp.dot(h, w2, preferred_element_type=jnp.float32) + b2     # (TB, S)
        state = state + dt_ref[t] * dstate
        sol_ref[pl.ds(t * TB, TB), :] = state

    # Fused quantile heads: one MXU matmul over the whole time-major slab.
    mu_ref[...] = jnp.dot(sol_ref[...], wq_ref[...],
                          preferred_element_type=jnp.float32)                # (T*TB, 3*obs)


def decoder_forward(z, params, dt, *, block_b=None):
    B, L = z.shape
    T = int(dt.shape[0])
    S = params["w_init"].shape[1]
    obs = params["wq50"].shape[1]

    # Pick a large batch block (multiple of 8) so the MXU M dimension is well
    # occupied and grid-step overhead is amortized; keep >=2 blocks when B is
    # big enough so the "parallel" axis can shard across TensorCores (v7x).
    if block_b is None:
        if B <= 16:
            block_b = max(8, _round_up(B, 8))
        else:
            block_b = min(256, _round_up(-(-B // 2), 8))
    TB = _round_up(int(block_b), 8)

    # Pad the batch so it divides evenly into blocks (padded rows are discarded).
    B_pad = _round_up(B, TB)
    z_p = z if B_pad == B else jnp.pad(z, ((0, B_pad - B), (0, 0)))
    nb = B_pad // TB

    # Fuse the three bias-free quantile heads into one weight matrix.
    wq_all = jnp.concatenate([params["wq25"], params["wq50"], params["wq75"]],
                             axis=1)                                         # (S, 3*obs)

    def full_spec(arr):
        nd = arr.ndim
        return pl.BlockSpec(arr.shape, lambda b, _nd=nd: (0,) * _nd)

    in_specs = [
        pl.BlockSpec((TB, L), lambda b: (b, 0)),        # z (batch-blocked, streamed)
        full_spec(params["w_init"]),
        full_spec(params["w1s"]),
        full_spec(params["w1z"]),
        full_spec(params["b1"]),
        full_spec(params["w2"]),
        full_spec(params["b2"]),
        full_spec(wq_all),
        pl.BlockSpec((T,), lambda b: (0,),
                     memory_space=pltpu.MemorySpace.SMEM),   # dt (scalars)
    ]
    out_specs = (
        pl.BlockSpec((T * TB, S), lambda b: (b, 0)),
        pl.BlockSpec((T * TB, 3 * obs), lambda b: (b, 0)),
    )
    out_shapes = (
        jax.ShapeDtypeStruct((nb * T * TB, S), jnp.float32),
        jax.ShapeDtypeStruct((nb * T * TB, 3 * obs), jnp.float32),
    )

    sol_flat, mu_flat = pl.pallas_call(
        decoder_kernel,
        grid=(nb,),
        out_shape=out_shapes,
        in_specs=in_specs,
        out_specs=out_specs,
        compiler_params=pltpu.CompilerParams(
            dimension_semantics=("parallel",)),   # shard batch blocks across TCs
    )(z_p, params["w_init"], params["w1s"], params["w1z"], params["b1"],
      params["w2"], params["b2"], wq_all, dt)

    # (nb * T * TB, S), time-major within each batch block -> (B, T, S)
    solution = (sol_flat.reshape(nb, T, TB, S).transpose(0, 2, 1, 3)
                .reshape(B_pad, T, S)[:B])
    mu = (mu_flat.reshape(nb, T, TB, 3 * obs).transpose(0, 2, 1, 3)
          .reshape(B_pad, T, 3 * obs)[:B])
    mu_25 = jnp.transpose(mu[..., 0 * obs:1 * obs], (0, 2, 1))   # (B, obs, T)
    mu_50 = jnp.transpose(mu[..., 1 * obs:2 * obs], (0, 2, 1))
    mu_75 = jnp.transpose(mu[..., 2 * obs:3 * obs], (0, 2, 1))
    # Constant-only std head: torch.ones_like(mu_50) * softplus(constant_std),
    # computed once on the wrapper side (removed from the kernel per review).
    std = jnp.broadcast_to(jax.nn.softplus(params["cstd"])[None, :, :],
                           mu_50.shape)
    return solution, mu_75, mu_50, mu_25, std


def reference_forward(z, params, dt):
    """Pure-JAX reference mirroring the kernel semantics."""
    T = dt.shape[0]
    state = z @ params["w_init"]
    zp = z @ params["w1z"]
    sols = [state]
    for t in range(1, T):
        h = jnp.tanh(state @ params["w1s"] + zp + params["b1"])
        dstate = h @ params["w2"] + params["b2"]
        state = state + dt[t] * dstate
        sols.append(state)
    sol = jnp.stack(sols, axis=1)                              # (B, T, S)
    mu25 = jnp.transpose(sol @ params["wq25"], (0, 2, 1))      # (B, obs, T)
    mu50 = jnp.transpose(sol @ params["wq50"], (0, 2, 1))
    mu75 = jnp.transpose(sol @ params["wq75"], (0, 2, 1))
    std = jnp.ones_like(mu50) * jax.nn.softplus(params["cstd"])[None]
    return sol, mu75, mu50, mu25, std


if __name__ == "__main__":
    # small, forward-consistent shapes
    L, S, H, OBS, T = 8, 8, 16, 4, 8
    CONSTANT_STD = 0.1

    times = jnp.linspace(0.0, 1.0, T).astype(jnp.float32)
    dt = jnp.concatenate([jnp.zeros((1,), jnp.float32), jnp.diff(times)])

    key = jax.random.PRNGKey(0)
    ks = jax.random.split(key, 12)
    params = {
        "w_init": 0.5 * jax.random.normal(ks[0], (L, S), jnp.float32),
        "w1s":    0.3 * jax.random.normal(ks[1], (S, H), jnp.float32),
        "w1z":    0.3 * jax.random.normal(ks[2], (L, H), jnp.float32),
        "b1":     0.1 * jax.random.normal(ks[3], (1, H), jnp.float32),
        "w2":     0.3 * jax.random.normal(ks[4], (H, S), jnp.float32),
        "b2":     0.1 * jax.random.normal(ks[5], (1, S), jnp.float32),
        "wq25":   0.5 * jax.random.normal(ks[6], (S, OBS), jnp.float32),
        "wq50":   0.5 * jax.random.normal(ks[7], (S, OBS), jnp.float32),
        "wq75":   0.5 * jax.random.normal(ks[8], (S, OBS), jnp.float32),
        "cstd":   jnp.ones((OBS, T), jnp.float32) * CONSTANT_STD,
    }

    # Case 1: tiny batch (exercises padding B=4 -> TB=8, single block).
    z_small = jax.random.normal(ks[9], (4, L), jnp.float32)
    outs = jax.block_until_ready(decoder_forward(z_small, params, dt))
    ref = reference_forward(z_small, params, dt)
    for got, want in zip(outs, ref):
        np.testing.assert_allclose(np.asarray(got), np.asarray(want),
                                   rtol=1e-3, atol=1e-3)

    # Case 2: non-multiple batch with multiple blocks (B=20 -> TB=16, nb=2).
    z_big = jax.random.normal(ks[10], (20, L), jnp.float32)
    outs2 = jax.block_until_ready(decoder_forward(z_big, params, dt))
    ref2 = reference_forward(z_big, params, dt)
    for got, want in zip(outs2, ref2):
        np.testing.assert_allclose(np.asarray(got), np.asarray(want),
                                   rtol=1e-3, atol=1e-3)

    print("KERNEL_OK")
</pallas_src>

<mosaic_0001>
module attributes {stable_mosaic.version = 11 : i64} {
  func.func @decoder_kernel(%arg0: i32, %arg1: memref<8x8xf32, #tpu.memory_space<vmem>>, %arg2: memref<8x8xf32, #tpu.memory_space<vmem>>, %arg3: memref<8x16xf32, #tpu.memory_space<vmem>>, %arg4: memref<8x16xf32, #tpu.memory_space<vmem>>, %arg5: memref<1x16xf32, #tpu.memory_space<vmem>>, %arg6: memref<16x8xf32, #tpu.memory_space<vmem>>, %arg7: memref<1x8xf32, #tpu.memory_space<vmem>>, %arg8: memref<8x12xf32, #tpu.memory_space<vmem>>, %arg9: memref<8xf32, #tpu.memory_space<smem>>, %arg10: memref<64x8xf32, #tpu.memory_space<vmem>>, %arg11: memref<64x12xf32, #tpu.memory_space<vmem>>) attributes {dimension_semantics = [#tpu.dimension_semantics<parallel>], iteration_bounds = array<i64: 1>, scalar_prefetch = 0 : i64, scratch_operands = 0 : i64, tpu.core_type = #tpu.core_type<tc>, window_params = [{transform_indices = @transform_0, window_bounds = array<i64: 8, 8>}, {pipeline_mode = #tpu.pipeline_mode<synchronous>, transform_indices = @transform_1, window_bounds = array<i64: 8, 8>}, {pipeline_mode = #tpu.pipeline_mode<synchronous>, transform_indices = @transform_2, window_bounds = array<i64: 8, 16>}, {pipeline_mode = #tpu.pipeline_mode<synchronous>, transform_indices = @transform_3, window_bounds = array<i64: 8, 16>}, {pipeline_mode = #tpu.pipeline_mode<synchronous>, transform_indices = @transform_4, window_bounds = array<i64: 1, 16>}, {pipeline_mode = #tpu.pipeline_mode<synchronous>, transform_indices = @transform_5, window_bounds = array<i64: 16, 8>}, {pipeline_mode = #tpu.pipeline_mode<synchronous>, transform_indices = @transform_6, window_bounds = array<i64: 1, 8>}, {pipeline_mode = #tpu.pipeline_mode<synchronous>, transform_indices = @transform_7, window_bounds = array<i64: 8, 12>}, {transform_indices = @transform_8, window_bounds = array<i64: 8>}, {transform_indices = @transform_9, window_bounds = array<i64: 64, 8>}, {transform_indices = @transform_10, window_bounds = array<i64: 64, 12>}]} {
    %c0 = arith.constant 0 : index
    %c0_0 = arith.constant 0 : index
    %0 = vector.load %arg1[%c0, %c0_0] : memref<8x8xf32, #tpu.memory_space<vmem>>, vector<8x8xf32>
    %c0_1 = arith.constant 0 : index
    %c0_2 = arith.constant 0 : index
    %1 = vector.load %arg2[%c0_1, %c0_2] : memref<8x8xf32, #tpu.memory_space<vmem>>, vector<8x8xf32>
    %cst = arith.constant dense<0.000000e+00> : vector<8x8xf32>
    %2 = tpu.matmul %0, %1, %cst {dimension_numbers = #tpu.dot_dimension_numbers<[1], [0], [0], [1], [0, 0, 1, 1], [], []>} : vector<8x8xf32>, vector<8x8xf32>, vector<8x8xf32> -> vector<8x8xf32>
    %c0_3 = arith.constant 0 : index
    %c0_4 = arith.constant 0 : index
    %3 = vector.load %arg4[%c0_3, %c0_4] : memref<8x16xf32, #tpu.memory_space<vmem>>, vector<8x16xf32>
    %cst_5 = arith.constant dense<0.000000e+00> : vector<8x16xf32>
    %4 = tpu.matmul %0, %3, %cst_5 {dimension_numbers = #tpu.dot_dimension_numbers<[1], [0], [0], [1], [0, 0, 1, 1], [], []>} : vector<8x8xf32>, vector<8x16xf32>, vector<8x16xf32> -> vector<8x16xf32>
    %c0_6 = arith.constant 0 : index
    %c0_7 = arith.constant 0 : index
    %5 = vector.load %arg5[%c0_6, %c0_7] : memref<1x16xf32, #tpu.memory_space<vmem>>, vector<1x16xf32>
    %6 = vector.broadcast %5 : vector<1x16xf32> to vector<8x16xf32>
    %7 = arith.addf %4, %6 : vector<8x16xf32>
    %c0_8 = arith.constant 0 : index
    %c0_9 = arith.constant 0 : index
    %8 = vector.load %arg7[%c0_8, %c0_9] : memref<1x8xf32, #tpu.memory_space<vmem>>, vector<1x8xf32>
    %9 = vector.shape_cast %8 : vector<1x8xf32> to vector<1x8xf32>
    %10 = vector.broadcast %9 : vector<1x8xf32> to vector<8x8xf32>
    %c0_10 = arith.constant 0 : index
    %c0_11 = arith.constant 0 : index
    %11 = vector.load %arg3[%c0_10, %c0_11] : memref<8x16xf32, #tpu.memory_space<vmem>>, vector<8x16xf32>
    %c0_12 = arith.constant 0 : index
    %c0_13 = arith.constant 0 : index
    %12 = vector.load %arg6[%c0_12, %c0_13] : memref<16x8xf32, #tpu.memory_space<vmem>>, vector<16x8xf32>
    %c0_14 = arith.constant 0 : index
    %c0_15 = arith.constant 0 : index
    %13 = vector.load %arg10[%c0_14, %c0_15] : memref<64x8xf32, #tpu.memory_space<vmem>>, vector<8x8xf32>
    tpu.vector_store %arg10[%c0_14, %c0_15], %2 {strides = array<i32>} : memref<64x8xf32, #tpu.memory_space<vmem>>, vector<8x8xf32>,
    %cst_16 = arith.constant dense<0.000000e+00> : vector<8x16xf32>
    %14 = tpu.matmul %2, %11, %cst_16 {dimension_numbers = #tpu.dot_dimension_numbers<[1], [0], [0], [1], [0, 0, 1, 1], [], []>} : vector<8x8xf32>, vector<8x16xf32>, vector<8x16xf32> -> vector<8x16xf32>
    %15 = arith.addf %14, %7 : vector<8x16xf32>
    %16 = math.tanh %15 : vector<8x16xf32>
    %cst_17 = arith.constant dense<0.000000e+00> : vector<8x8xf32>
    %17 = tpu.matmul %16, %12, %cst_17 {dimension_numbers = #tpu.dot_dimension_numbers<[1], [0], [0], [1], [0, 0, 1, 1], [], []>} : vector<8x16xf32>, vector<16x8xf32>, vector<8x8xf32> -> vector<8x8xf32>
    %18 = arith.addf %17, %10 : vector<8x8xf32>
    %c1 = arith.constant 1 : index
    %19 = memref.load %arg9[%c1] : memref<8xf32, #tpu.memory_space<smem>>
    %20 = vector.broadcast %19 : f32 to vector<8x8xf32>
    %21 = arith.mulf %20, %18 : vector<8x8xf32>
    %22 = arith.addf %2, %21 : vector<8x8xf32>
    %c8 = arith.constant 8 : index
    %c0_18 = arith.constant 0 : index
    %23 = vector.load %arg10[%c8, %c0_18] : memref<64x8xf32, #tpu.memory_space<vmem>>, vector<8x8xf32>
    tpu.vector_store %arg10[%c8, %c0_18], %22 {strides = array<i32>} : memref<64x8xf32, #tpu.memory_space<vmem>>, vector<8x8xf32>,
    %cst_19 = arith.constant dense<0.000000e+00> : vector<8x16xf32>
    %24 = tpu.matmul %22, %11, %cst_19 {dimension_numbers = #tpu.dot_dimension_numbers<[1], [0], [0], [1], [0, 0, 1, 1], [], []>} : vector<8x8xf32>, vector<8x16xf32>, vector<8x16xf32> -> vector<8x16xf32>
    %25 = arith.addf %24, %7 : vector<8x16xf32>
    %26 = math.tanh %25 : vector<8x16xf32>
    %cst_20 = arith.constant dense<0.000000e+00> : vector<8x8xf32>
    %27 = tpu.matmul %26, %12, %cst_20 {dimension_numbers = #tpu.dot_dimension_numbers<[1], [0], [0], [1], [0, 0, 1, 1], [], []>} : vector<8x16xf32>, vector<16x8xf32>, vector<8x8xf32> -> vector<8x8xf32>
    %28 = arith.addf %27, %10 : vector<8x8xf32>
    %c2 = arith.constant 2 : index
    %29 = memref.load %arg9[%c2] : memref<8xf32, #tpu.memory_space<smem>>
    %30 = vector.broadcast %29 : f32 to vector<8x8xf32>
    %31 = arith.mulf %30, %28 : vector<8x8xf32>
    %32 = arith.addf %22, %31 : vector<8x8xf32>
    %c16 = arith.constant 16 : index
    %c0_21 = arith.constant 0 : index
    %33 = vector.load %arg10[%c16, %c0_21] : memref<64x8xf32, #tpu.memory_space<vmem>>, vector<8x8xf32>
    tpu.vector_store %arg10[%c16, %c0_21], %32 {strides = array<i32>} : memref<64x8xf32, #tpu.memory_space<vmem>>, vector<8x8xf32>,
    %cst_22 = arith.constant dense<0.000000e+00> : vector<8x16xf32>
    %34 = tpu.matmul %32, %11, %cst_22 {dimension_numbers = #tpu.dot_dimension_numbers<[1], [0], [0], [1], [0, 0, 1, 1], [], []>} : vector<8x8xf32>, vector<8x16xf32>, vector<8x16xf32> -> vector<8x16xf32>
    %35 = arith.addf %34, %7 : vector<8x16xf32>
    %36 = math.tanh %35 : vector<8x16xf32>
    %cst_23 = arith.constant dense<0.000000e+00> : vector<8x8xf32>
    %37 = tpu.matmul %36, %12, %cst_23 {dimension_numbers = #tpu.dot_dimension_numbers<[1], [0], [0], [1], [0, 0, 1, 1], [], []>} : vector<8x16xf32>, vector<16x8xf32>, vector<8x8xf32> -> vector<8x8xf32>
    %38 = arith.addf %37, %10 : vector<8x8xf32>
    %c3 = arith.constant 3 : index
    %39 = memref.load %arg9[%c3] : memref<8xf32, #tpu.memory_space<smem>>
    %40 = vector.broadcast %39 : f32 to vector<8x8xf32>
    %41 = arith.mulf %40, %38 : vector<8x8xf32>
    %42 = arith.addf %32, %41 : vector<8x8xf32>
    %c24 = arith.constant 24 : index
    %c0_24 = arith.constant 0 : index
    %43 = vector.load %arg10[%c24, %c0_24] : memref<64x8xf32, #tpu.memory_space<vmem>>, vector<8x8xf32>
    tpu.vector_store %arg10[%c24, %c0_24], %42 {strides = array<i32>} : memref<64x8xf32, #tpu.memory_space<vmem>>, vector<8x8xf32>,
    %cst_25 = arith.constant dense<0.000000e+00> : vector<8x16xf32>
    %44 = tpu.matmul %42, %11, %cst_25 {dimension_numbers = #tpu.dot_dimension_numbers<[1], [0], [0], [1], [0, 0, 1, 1], [], []>} : vector<8x8xf32>, vector<8x16xf32>, vector<8x16xf32> -> vector<8x16xf32>
    %45 = arith.addf %44, %7 : vector<8x16xf32>
    %46 = math.tanh %45 : vector<8x16xf32>
    %cst_26 = arith.constant dense<0.000000e+00> : vector<8x8xf32>
    %47 = tpu.matmul %46, %12, %cst_26 {dimension_numbers = #tpu.dot_dimension_numbers<[1], [0], [0], [1], [0, 0, 1, 1], [], []>} : vector<8x16xf32>, vector<16x8xf32>, vector<8x8xf32> -> vector<8x8xf32>
    %48 = arith.addf %47, %10 : vector<8x8xf32>
    %c4 = arith.constant 4 : index
    %49 = memref.load %arg9[%c4] : memref<8xf32, #tpu.memory_space<smem>>
    %50 = vector.broadcast %49 : f32 to vector<8x8xf32>
    %51 = arith.mulf %50, %48 : vector<8x8xf32>
    %52 = arith.addf %42, %51 : vector<8x8xf32>
    %c32 = arith.constant 32 : index
    %c0_27 = arith.constant 0 : index
    %53 = vector.load %arg10[%c32, %c0_27] : memref<64x8xf32, #tpu.memory_space<vmem>>, vector<8x8xf32>
    tpu.vector_store %arg10[%c32, %c0_27], %52 {strides = array<i32>} : memref<64x8xf32, #tpu.memory_space<vmem>>, vector<8x8xf32>,
    %cst_28 = arith.constant dense<0.000000e+00> : vector<8x16xf32>
    %54 = tpu.matmul %52, %11, %cst_28 {dimension_numbers = #tpu.dot_dimension_numbers<[1], [0], [0], [1], [0, 0, 1, 1], [], []>} : vector<8x8xf32>, vector<8x16xf32>, vector<8x16xf32> -> vector<8x16xf32>
    %55 = arith.addf %54, %7 : vector<8x16xf32>
    %56 = math.tanh %55 : vector<8x16xf32>
    %cst_29 = arith.constant dense<0.000000e+00> : vector<8x8xf32>
    %57 = tpu.matmul %56, %12, %cst_29 {dimension_numbers = #tpu.dot_dimension_numbers<[1], [0], [0], [1], [0, 0, 1, 1], [], []>} : vector<8x16xf32>, vector<16x8xf32>, vector<8x8xf32> -> vector<8x8xf32>
    %58 = arith.addf %57, %10 : vector<8x8xf32>
    %c5 = arith.constant 5 : index
    %59 = memref.load %arg9[%c5] : memref<8xf32, #tpu.memory_space<smem>>
    %60 = vector.broadcast %59 : f32 to vector<8x8xf32>
    %61 = arith.mulf %60, %58 : vector<8x8xf32>
    %62 = arith.addf %52, %61 : vector<8x8xf32>
    %c40 = arith.constant 40 : index
    %c0_30 = arith.constant 0 : index
    %63 = vector.load %arg10[%c40, %c0_30] : memref<64x8xf32, #tpu.memory_space<vmem>>, vector<8x8xf32>
    tpu.vector_store %arg10[%c40, %c0_30], %62 {strides = array<i32>} : memref<64x8xf32, #tpu.memory_space<vmem>>, vector<8x8xf32>,
    %cst_31 = arith.constant dense<0.000000e+00> : vector<8x16xf32>
    %64 = tpu.matmul %62, %11, %cst_31 {dimension_numbers = #tpu.dot_dimension_numbers<[1], [0], [0], [1], [0, 0, 1, 1], [], []>} : vector<8x8xf32>, vector<8x16xf32>, vector<8x16xf32> -> vector<8x16xf32>
    %65 = arith.addf %64, %7 : vector<8x16xf32>
    %66 = math.tanh %65 : vector<8x16xf32>
    %cst_32 = arith.constant dense<0.000000e+00> : vector<8x8xf32>
    %67 = tpu.matmul %66, %12, %cst_32 {dimension_numbers = #tpu.dot_dimension_numbers<[1], [0], [0], [1], [0, 0, 1, 1], [], []>} : vector<8x16xf32>, vector<16x8xf32>, vector<8x8xf32> -> vector<8x8xf32>
    %68 = arith.addf %67, %10 : vector<8x8xf32>
    %c6 = arith.constant 6 : index
    %69 = memref.load %arg9[%c6] : memref<8xf32, #tpu.memory_space<smem>>
    %70 = vector.broadcast %69 : f32 to vector<8x8xf32>
    %71 = arith.mulf %70, %68 : vector<8x8xf32>
    %72 = arith.addf %62, %71 : vector<8x8xf32>
    %c48 = arith.constant 48 : index
    %c0_33 = arith.constant 0 : index
    %73 = vector.load %arg10[%c48, %c0_33] : memref<64x8xf32, #tpu.memory_space<vmem>>, vector<8x8xf32>
    tpu.vector_store %arg10[%c48, %c0_33], %72 {strides = array<i32>} : memref<64x8xf32, #tpu.memory_space<vmem>>, vector<8x8xf32>,
    %cst_34 = arith.constant dense<0.000000e+00> : vector<8x16xf32>
    %74 = tpu.matmul %72, %11, %cst_34 {dimension_numbers = #tpu.dot_dimension_numbers<[1], [0], [0], [1], [0, 0, 1, 1], [], []>} : vector<8x8xf32>, vector<8x16xf32>, vector<8x16xf32> -> vector<8x16xf32>
    %75 = arith.addf %74, %7 : vector<8x16xf32>
    %76 = math.tanh %75 : vector<8x16xf32>
    %cst_35 = arith.constant dense<0.000000e+00> : vector<8x8xf32>
    %77 = tpu.matmul %76, %12, %cst_35 {dimension_numbers = #tpu.dot_dimension_numbers<[1], [0], [0], [1], [0, 0, 1, 1], [], []>} : vector<8x16xf32>, vector<16x8xf32>, vector<8x8xf32> -> vector<8x8xf32>
    %78 = arith.addf %77, %10 : vector<8x8xf32>
    %c7 = arith.constant 7 : index
    %79 = memref.load %arg9[%c7] : memref<8xf32, #tpu.memory_space<smem>>
    %80 = vector.broadcast %79 : f32 to vector<8x8xf32>
    %81 = arith.mulf %80, %78 : vector<8x8xf32>
    %82 = arith.addf %72, %81 : vector<8x8xf32>
    %c56 = arith.constant 56 : index
    %c0_36 = arith.constant 0 : index
    %83 = vector.load %arg10[%c56, %c0_36] : memref<64x8xf32, #tpu.memory_space<vmem>>, vector<8x8xf32>
    tpu.vector_store %arg10[%c56, %c0_36], %82 {strides = array<i32>} : memref<64x8xf32, #tpu.memory_space<vmem>>, vector<8x8xf32>,
    %c0_37 = arith.constant 0 : index
    %c0_38 = arith.constant 0 : index
    %84 = vector.load %arg10[%c0_37, %c0_38] : memref<64x8xf32, #tpu.memory_space<vmem>>, vector<64x8xf32>
    %c0_39 = arith.constant 0 : index
    %c0_40 = arith.constant 0 : index
    %85 = vector.load %arg8[%c0_39, %c0_40] : memref<8x12xf32, #tpu.memory_space<vmem>>, vector<8x12xf32>
    %cst_41 = arith.constant dense<0.000000e+00> : vector<64x12xf32>
    %86 = tpu.matmul %84, %85, %cst_41 {dimension_numbers = #tpu.dot_dimension_numbers<[1], [0], [0], [1], [0, 0, 1, 1], [], []>} : vector<64x8xf32>, vector<8x12xf32>, vector<64x12xf32> -> vector<64x12xf32>
    %c0_42 = arith.constant 0 : index
    %c0_43 = arith.constant 0 : index
    %87 = vector.load %arg11[%c0_42, %c0_43] : memref<64x12xf32, #tpu.memory_space<vmem>>, vector<64x12xf32>
    tpu.vector_store %arg11[%c0_42, %c0_43], %86 {strides = array<i32>} : memref<64x12xf32, #tpu.memory_space<vmem>>, vector<64x12xf32>,
    return
  }
  func.func @transform_0(%arg0: i32) -> (i32, i32) {
    %c0_i32 = arith.constant 0 : i32
    %c0_i32_0 = arith.constant 0 : i32
    return %arg0, %c0_i32 : i32, i32
  }
  func.func @transform_1(%arg0: i32) -> (i32, i32) {
    %c0_i32 = arith.constant 0 : i32
    %c0_i32_0 = arith.constant 0 : i32
    %c0_i32_1 = arith.constant 0 : i32
    return %c0_i32, %c0_i32_0 : i32, i32
  }
  func.func @transform_2(%arg0: i32) -> (i32, i32) {
    %c0_i32 = arith.constant 0 : i32
    %c0_i32_0 = arith.constant 0 : i32
    %c0_i32_1 = arith.constant 0 : i32
    return %c0_i32, %c0_i32_0 : i32, i32
  }
  func.func @transform_3(%arg0: i32) -> (i32, i32) {
    %c0_i32 = arith.constant 0 : i32
    %c0_i32_0 = arith.constant 0 : i32
    %c0_i32_1 = arith.constant 0 : i32
    return %c0_i32, %c0_i32_0 : i32, i32
  }
  func.func @transform_4(%arg0: i32) -> (i32, i32) {
    %c0_i32 = arith.constant 0 : i32
    %c0_i32_0 = arith.constant 0 : i32
    %c0_i32_1 = arith.constant 0 : i32
    return %c0_i32, %c0_i32_0 : i32, i32
  }
  func.func @transform_5(%arg0: i32) -> (i32, i32) {
    %c0_i32 = arith.constant 0 : i32
    %c0_i32_0 = arith.constant 0 : i32
    %c0_i32_1 = arith.constant 0 : i32
    return %c0_i32, %c0_i32_0 : i32, i32
  }
  func.func @transform_6(%arg0: i32) -> (i32, i32) {
    %c0_i32 = arith.constant 0 : i32
    %c0_i32_0 = arith.constant 0 : i32
    %c0_i32_1 = arith.constant 0 : i32
    return %c0_i32, %c0_i32_0 : i32, i32
  }
  func.func @transform_7(%arg0: i32) -> (i32, i32) {
    %c0_i32 = arith.constant 0 : i32
    %c0_i32_0 = arith.constant 0 : i32
    %c0_i32_1 = arith.constant 0 : i32
    return %c0_i32, %c0_i32_0 : i32, i32
  }
  func.func @transform_8(%arg0: i32) -> i32 {
    %c0_i32 = arith.constant 0 : i32
    %c0_i32_0 = arith.constant 0 : i32
    return %c0_i32 : i32
  }
  func.func @transform_9(%arg0: i32) -> (i32, i32) {
    %c0_i32 = arith.constant 0 : i32
    %c0_i32_0 = arith.constant 0 : i32
    return %arg0, %c0_i32 : i32, i32
  }
  func.func @transform_10(%arg0: i32) -> (i32, i32) {
    %c0_i32 = arith.constant 0 : i32
    %c0_i32_0 = arith.constant 0 : i32
    return %arg0, %c0_i32 : i32, i32
  }
}

</mosaic_0001>

<bundles_post_ra>
// kernel: tpu_custom_call.1
= control target key start
LH: loop header
LB: loop body
LE: loop exit
PB: predicated region body
PF: predicated region fallthrough
CT: control target
= control target key end

     0   :  { %16 = vsyncpa [#allocation3], 0  ;;  %s930_s0 = inlined_call_operand.vmem [shape: f32[8,8], index: 0, kind: input, shape index: {}]   ;;  %s931_s1 = inlined_call_operand.vmem [shape: f32[8,8], index: 1, kind: input, shape index: {}]   ;;  %s932_s2 = inlined_call_operand.vmem [shape: f32[8,16], index: 2, kind: input, shape index: {}]   ;;  %s933_s3 = inlined_call_operand.hbm [shape: f32[8,16], index: 3, kind: input, shape index: {}]   ;;  %s934_s4 = inlined_call_operand.vmem [shape: f32[1,16], index: 4, kind: input, shape index: {}]   ;;  %s935_s5 = inlined_call_operand.vmem [shape: f32[16,8], index: 5, kind: input, shape index: {}]   ;;  %s936_s6 = inlined_call_operand.vmem [shape: f32[1,8], index: 6, kind: input, shape index: {}]   ;;  %s937_s7 = inlined_call_operand.hbm [shape: f32[8,12], index: 7, kind: input, shape index: {}]   ;;  %s938_s8 = inlined_call_operand.vmem [shape: f32[8], index: 8, kind: input, shape index: {}]   ;;  %s939_s9 = inlined_call_operand.vmem [shape: f32[64,8], index: 9, kind: output, shape index: {0}]   ;;  %s940_s10 = inlined_call_operand.vmem [shape: f32[64,12], index: 10, kind: output, shape index: {1}]  }
   0x1   :  { %17 = vsyncpa [#allocation6], 0  ;;  %s30_s15 = sshll.u32 %s933_s3, 4  ;;  %s31_s15 = int_to_ptr.hbm [resolvable:$true] %s30_s15 }
   0x2   :  { %18 = vsyncpa [#allocation4], 0  ;;  %s712_s16 = smov [#allocation2]   ;;  %s47_s20 = sshll.u32 %s937_s7, 4  ;;  %s48_s20 = int_to_ptr.hbm [resolvable:$true] %s47_s20 }
   0x3   :  { %s32_s17 = sshll.u32 %s712_s16, 4  ;;  %s713_s21 = smov [#allocation5]   ;;  %s33_s17 = int_to_ptr.vmem [resolvable:$true] %s32_s17 }
   0x4   :  { %35 = dma.hbm_to_vmem [thread:$0]  %s31_s15, 128, %s33_s17, [#allocation3]  }
   0x5   :  { %s49_s22 = sshll.u32 %s713_s21, 4  ;;  %s58_s25 = sshll.u32 %s938_s8, 4  ;;  %s50_s22 = int_to_ptr.vmem [resolvable:$true] %s49_s22  ;;  %s59_s25 = int_to_ptr.vmem [resolvable:$true] %s58_s25 }
   0x6   :  { %52 = dma.hbm_to_vmem [thread:$0]  %s48_s20, 128, %s50_s22, [#allocation6]  }
   0x7   :  { %s714_s3 = smov [#allocation7]  }
   0x8   :  { %61 = dma.vmem_to_smem %s59_s25, 16, %s714_s3, [#allocation4]  }
   0x9   :  { %706 = dma.done.wait [#allocation3], 128  }
   0xa   :  { %707 = vsyncadd [#allocation3], 4294967168 }
   0xb   :  { %708 = dma.done.wait [#allocation6], 128  }
   0xc   :  { %709 = vsyncadd [#allocation6], 4294967168 }
   0xd   :  { %710 = dma.done.wait [#allocation4], 16  }
   0xe   :  { %711 = vsyncadd [#allocation4], 4294967280 }
   0xf   :  { %74 = sfence }
  0x10   :  { %v76_v0 = vld [vmem:[%s931_s1] sm:$0xff]  ;;  %vm77_vm0 = vcmask 64512   ;;  %v132_v5 = vld [vmem:[%s935_s5 + $0x8] sm:$0xff]  ;;  %vm158_vm1 = vcmask 130048   ;;  %s603_s20 = sld [smem:[#allocation7 + $0x3]]  ;;  %vm573_vm2 = vcmask 97280  }
  0x11   :  { %v75_v1 = vld [vmem:[%s930_s0] sm:$0xff]  ;;  %96 = vmatpush.msra.mxu0 %v76_v0  ;;  %176 = vmatpush.msra.mxu3 %v132_v5  ;;  %s606_s23 = sld [smem:[#allocation7 + $0x4]]  ;;  %v507_v46 = vld [vmem:[#allocation5] sm:$0xff] }
  0x12   :  { %593 = vmatmul.msk.f32.vlgmr.msra.gmra.mxu0 %vm77_vm0, %v75_v1  ;;  %v130_v2 = vld [vmem:[%s932_s2] sm:$0xff]  ;;  %s609_s3 = sld [smem:[#allocation7 + $0x5]] }
  0x13   :  { %152 = vmatpush.msra.mxu2 %v130_v2  ;;  %205 = vmatpush.msrb.mxu0 %v130_v2  ;;  %v101_v3 = vld [vmem:[#allocation2] sm:$0xff]  ;;  %s615_s27 = sld [smem:[#allocation7 + $0x7]] }
  0x14   :  { %121 = vmatpush.msra.mxu1 %v101_v3  ;;  %v131_v6 = vld [vmem:[%s935_s5] sm:$0xff]  ;;  %s597_s5 = sld [smem:[#allocation7 + $0x1]] }
  0x15   :  { %257 = vmatpush.msrb.mxu2 %v130_v2  ;;  %309 = vmatpush.msra.mxu0 %v130_v2  ;;  %v630_v7 = vld [vmem:[%s934_s4] ss:$0 sm:$0xff] }
  0x16   :  { %594 = vmatmul.msk.f32.vlgmr.msra.gmra.mxu1 %vm77_vm0, %v75_v1  ;;  %177 = vmatpush.msra.mxu3 %v131_v6  ;;  %v811_v13 = vld [vmem:[%s936_s6] ss:$0 sm:$0xff]  ;;  %s600_s6 = sld [smem:[#allocation7 + $0x2]]  ;;  %v287_v31 = vstv %s603_s20 }
  0x17   :  { %228 = vmatpush.msrb.mxu1 %v132_v5  ;;  %v339_v39 = vstv %s606_s23 }
  0x18   :  { %280 = vmatpush.msrb.mxu3 %v132_v5  ;;  %v391_v48 = vstv %s609_s3 }
  0x19   :  { %229 = vmatpush.msrb.mxu1 %v131_v6 }
  0x1a   :  { %281 = vmatpush.msrb.mxu3 %v131_v6  ;;  %v183_v15 = vstv %s597_s5  ;;  %s612_s5 = sld [smem:[#allocation7 + $0x6]] }
  0x1b   :  { %332 = vmatpush.msra.mxu1 %v132_v5 }
  0x1c   :  { %v235_v23 = vstv %s600_s6 }
  0x1d   :  { %333 = vmatpush.msra.mxu1 %v131_v6 }
  0x20   :  { %v443_v62 = vstv %s612_s5 }
  0x8f   :  { %v98_v4 = vpop.f32.mrf.mxu0 }
  0x90   :  { %133 = vst.msk [vmem:[%s939_s9] sm:$0xff] %vm77_vm0, %v98_v4  ;;  %595 = vmatmul.msk.f32.vlgmr.msra.gmra.mxu2 %vm77_vm0, %v98_v4 }
  0x91   :  { %361 = vmatpush.msra.mxu2 %v130_v2 }
  0x93   :  { %v123_v8 = vpop.f32.mrf.mxu1 }
  0x94   :  { %v804_v9 = vadd.f32 %v630_v7, %v123_v8 }
  0x97   :  { %v499_v52 = vld [vmem:[%s939_s9] sm:$0xff] }
 0x113   :  { %v154_v10 = vpop.f32.mrf.mxu2 }
 0x114   :  { %v155_v11 = vadd.f32 %v154_v10, %v804_v9 }
 0x116   :  { %632 = vtanh.f32 %v155_v11 }
 0x11c   :  { %v633_v12 = vpop.eup %632 }
 0x11d   :  { %596 = vmatmul.msk.f32.vlgmr.msra.gmra.mxu3 %vm158_vm1, %v633_v12 }
 0x11e   :  { %384 = vmatpush.msra.mxu3 %v132_v5 }
 0x120   :  { %385 = vmatpush.msra.mxu3 %v131_v6 }
 0x1a0   :  { %v179_v14 = vpop.f32.mrf.mxu3 }
 0x1a1   :  { %v180_v16 = vadd.f32 %v811_v13, %v179_v14  ;;  %v495_v14 = vstv %s615_s27 }
 0x1a3   :  { %v184_v17 = vmul.f32 %v183_v15, %v180_v16 }
 0x1a5   :  { %v185_v18 = vadd.f32 %v184_v17, %v98_v4 }
 0x1a7   :  { %186 = vst.msk [vmem:[%s939_s9 + $0x8] sm:$0xff] %vm77_vm0, %v185_v18  ;;  %598 = vmatmul.msk.f32.vlgmr.msrb.gmra.mxu0 %vm77_vm0, %v185_v18 }
 0x1a8   :  { %413 = vmatpush.msrb.mxu0 %v130_v2 }
 0x1ae   :  { %v500_v53 = vld [vmem:[%s939_s9 + $0x8] sm:$0xff] }
 0x224   :  { %v207_v19 = vpop.f32.mrf.mxu0 }
 0x225   :  { %v208_v20 = vadd.f32 %v207_v19, %v804_v9 }
 0x227   :  { %634 = vtanh.f32 %v208_v20 }
 0x22d   :  { %v635_v21 = vpop.eup %634 }
 0x22e   :  { %599 = vmatmul.msk.f32.vlgmr.msrb.gmra.mxu1 %vm158_vm1, %v635_v21 }
 0x22f   :  { %436 = vmatpush.msrb.mxu1 %v132_v5 }
 0x231   :  { %437 = vmatpush.msrb.mxu1 %v131_v6 }
 0x2ab   :  { %v231_v22 = vpop.f32.mrf.mxu1 }
 0x2ac   :  { %v232_v24 = vadd.f32 %v811_v13, %v231_v22 }
 0x2ae   :  { %v236_v25 = vmul.f32 %v235_v23, %v232_v24 }
 0x2b0   :  { %v237_v26 = vadd.f32 %v236_v25, %v185_v18 }
 0x2b2   :  { %238 = vst.msk [vmem:[%s939_s9 + $0x10] sm:$0xff] %vm77_vm0, %v237_v26  ;;  %601 = vmatmul.msk.f32.vlgmr.msrb.gmra.mxu2 %vm77_vm0, %v237_v26 }
 0x2b3   :  { %465 = vmatpush.msrb.mxu2 %v130_v2 }
 0x2b9   :  { %v501_v59 = vld [vmem:[%s939_s9 + $0x10] sm:$0xff] }
 0x335   :  { %v259_v27 = vpop.f32.mrf.mxu2 }
 0x336   :  { %v260_v28 = vadd.f32 %v259_v27, %v804_v9 }
 0x338   :  { %636 = vtanh.f32 %v260_v28 }
 0x33e   :  { %v637_v29 = vpop.eup %636 }
 0x33f   :  { %602 = vmatmul.msk.f32.vlgmr.msrb.gmra.mxu3 %vm158_vm1, %v637_v29 }
 0x340   :  { %488 = vmatpush.msrb.mxu3 %v132_v5 }
 0x342   :  { %489 = vmatpush.msrb.mxu3 %v131_v6 }
 0x3c2   :  { %v283_v30 = vpop.f32.mrf.mxu3 }
 0x3c3   :  { %v284_v32 = vadd.f32 %v811_v13, %v283_v30 }
 0x3c5   :  { %v288_v33 = vmul.f32 %v287_v31, %v284_v32 }
 0x3c7   :  { %v289_v34 = vadd.f32 %v288_v33, %v237_v26 }
 0x3c9   :  { %290 = vst.msk [vmem:[%s939_s9 + $0x18] sm:$0xff] %vm77_vm0, %v289_v34  ;;  %604 = vmatmul.msk.f32.vlgmr.msra.gmra.mxu0 %vm77_vm0, %v289_v34 }
 0x3ca   :  { %547 = vmatpush.msra.mxu0 %v507_v46 }
 0x3d0   :  { %v502_v60 = vld [vmem:[%s939_s9 + $0x18] sm:$0xff] }
 0x446   :  { %v311_v35 = vpop.f32.mrf.mxu0 }
 0x447   :  { %v312_v36 = vadd.f32 %v311_v35, %v804_v9 }
 0x449   :  { %638 = vtanh.f32 %v312_v36 }
 0x44f   :  { %v639_v37 = vpop.eup %638 }
 0x450   :  { %605 = vmatmul.msk.f32.vlgmr.msra.gmra.mxu1 %vm158_vm1, %v639_v37 }
 0x451   :  { %624 = vmatpush.msra.mxu1 %v507_v46 }
 0x4cd   :  { %v335_v38 = vpop.f32.mrf.mxu1 }
 0x4ce   :  { %v336_v40 = vadd.f32 %v811_v13, %v335_v38 }
 0x4d0   :  { %v340_v41 = vmul.f32 %v339_v39, %v336_v40 }
 0x4d2   :  { %v341_v42 = vadd.f32 %v340_v41, %v289_v34 }
 0x4d4   :  { %342 = vst.msk [vmem:[%s939_s9 + $0x20] sm:$0xff] %vm77_vm0, %v341_v42  ;;  %607 = vmatmul.msk.f32.vlgmr.msra.gmra.mxu2 %vm77_vm0, %v341_v42 }
 0x4d5   :  { %625 = vmatpush.msra.mxu2 %v507_v46 }
 0x4db   :  { %v503_v3 = vld [vmem:[%s939_s9 + $0x20] sm:$0xff] }
 0x557   :  { %v363_v43 = vpop.f32.mrf.mxu2 }
 0x558   :  { %v364_v44 = vadd.f32 %v363_v43, %v804_v9 }
 0x55a   :  { %640 = vtanh.f32 %v364_v44 }
 0x560   :  { %v641_v45 = vpop.eup %640 }
 0x561   :  { %608 = vmatmul.msk.f32.vlgmr.msra.gmra.mxu3 %vm158_vm1, %v641_v45 }
 0x562   :  { %626 = vmatpush.msra.mxu3 %v507_v46 }
 0x5e4   :  { %v387_v47 = vpop.f32.mrf.mxu3 }
 0x5e5   :  { %v388_v49 = vadd.f32 %v811_v13, %v387_v47 }
 0x5e7   :  { %v392_v50 = vmul.f32 %v391_v48, %v388_v49 }
 0x5e9   :  { %v393_v51 = vadd.f32 %v392_v50, %v341_v42 }
 0x5eb   :  { %394 = vst.msk [vmem:[%s939_s9 + $0x28] sm:$0xff] %vm77_vm0, %v393_v51  ;;  %610 = vmatmul.msk.f32.vlgmr.msrb.gmra.mxu0 %vm77_vm0, %v393_v51 }
 0x5f2   :  { %v504_v5 = vld [vmem:[%s939_s9 + $0x28] sm:$0xff] }
 0x5f3   :  { %616 = vmatmul.msk.f32.vlgmr.msra.gmra.mxu0 %vm77_vm0, %v499_v52 }
 0x5fb   :  { %617 = vmatmul.msk.f32.gmra.mxu0 %vm77_vm0, %v500_v53 }
 0x668   :  { %v415_v54 = vpop.f32.mrf.mxu0 }
 0x669   :  { %v416_v55 = vadd.f32 %v415_v54, %v804_v9 }
 0x66b   :  { %642 = vtanh.f32 %v416_v55 }
 0x670   :  { %v549_v56 = vpop.f32.mrf.mxu0 }
 0x671   :  { %v643_v57 = vpop.eup %642  ;;  %574 = vst.msk [vmem:[%s940_s10] sm:$0xff] %vm573_vm2, %v549_v56 }
 0x672   :  { %611 = vmatmul.msk.f32.vlgmr.msrb.gmra.mxu1 %vm158_vm1, %v643_v57 }
 0x678   :  { %v552_v58 = vpop.f32.mrf.mxu0 }
 0x679   :  { %575 = vst.msk [vmem:[%s940_s10 + $0x8] sm:$0xff] %vm573_vm2, %v552_v58 }
 0x67a   :  { %618 = vmatmul.msk.f32.vlgmr.msra.gmra.mxu1 %vm77_vm0, %v501_v59 }
 0x682   :  { %619 = vmatmul.msk.f32.gmra.mxu1 %vm77_vm0, %v502_v60 }
 0x6ef   :  { %v439_v61 = vpop.f32.mrf.mxu1 }
 0x6f0   :  { %v440_v63 = vadd.f32 %v811_v13, %v439_v61 }
 0x6f2   :  { %v444_v0 = vmul.f32 %v443_v62, %v440_v63 }
 0x6f4   :  { %v445_v1 = vadd.f32 %v444_v0, %v393_v51 }
 0x6f6   :  { %446 = vst.msk [vmem:[%s939_s9 + $0x30] sm:$0xff] %vm77_vm0, %v445_v1  ;;  %613 = vmatmul.msk.f32.vlgmr.msrb.gmra.mxu2 %vm77_vm0, %v445_v1 }
 0x6f7   :  { %v555_v2 = vpop.f32.mrf.mxu1 }
 0x6f8   :  { %576 = vst.msk [vmem:[%s940_s10 + $0x10] sm:$0xff] %vm573_vm2, %v555_v2 }
 0x6fe   :  { %620 = vmatmul.msk.f32.vlgmr.msra.gmra.mxu2 %vm77_vm0, %v503_v3 }
 0x6ff   :  { %v558_v4 = vpop.f32.mrf.mxu1 }
 0x700   :  { %577 = vst.msk [vmem:[%s940_s10 + $0x18] sm:$0xff] %vm573_vm2, %v558_v4 }
 0x706   :  { %621 = vmatmul.msk.f32.gmra.mxu2 %vm77_vm0, %v504_v5 }
 0x779   :  { %v467_v6 = vpop.f32.mrf.mxu2 }
 0x77a   :  { %v468_v7 = vadd.f32 %v467_v6, %v804_v9  ;;  %v505_v9 = vld [vmem:[%s939_s9 + $0x30] sm:$0xff] }
 0x77c   :  { %644 = vtanh.f32 %v468_v7 }
 0x781   :  { %v561_v8 = vpop.f32.mrf.mxu2 }
 0x782   :  { %v645_v10 = vpop.eup %644  ;;  %578 = vst.msk [vmem:[%s940_s10 + $0x20] sm:$0xff] %vm573_vm2, %v561_v8 }
 0x783   :  { %614 = vmatmul.msk.f32.vlgmr.msrb.gmra.mxu3 %vm158_vm1, %v645_v10 }
 0x789   :  { %v564_v11 = vpop.f32.mrf.mxu2 }
 0x78a   :  { %579 = vst.msk [vmem:[%s940_s10 + $0x28] sm:$0xff] %vm573_vm2, %v564_v11 }
 0x78b   :  { %622 = vmatmul.msk.f32.vlgmr.msra.gmra.mxu3 %vm77_vm0, %v505_v9 }
 0x806   :  { %v491_v12 = vpop.f32.mrf.mxu3 }
 0x807   :  { %v492_v15 = vadd.f32 %v811_v13, %v491_v12 }
 0x809   :  { %v496_v16 = vmul.f32 %v495_v14, %v492_v15 }
 0x80b   :  { %v497_v17 = vadd.f32 %v496_v16, %v445_v1 }
 0x80d   :  { %498 = vst.msk [vmem:[%s939_s9 + $0x38] sm:$0xff] %vm77_vm0, %v497_v17 }
 0x80e   :  { %v567_v18 = vpop.f32.mrf.mxu3 }
 0x80f   :  { %580 = vst.msk [vmem:[%s940_s10 + $0x30] sm:$0xff] %vm573_vm2, %v567_v18 }
 0x814   :  { %v506_v19 = vld [vmem:[%s939_s9 + $0x38] sm:$0xff] }
 0x815   :  { %623 = vmatmul.msk.f32.gmra.mxu3 %vm77_vm0, %v506_v19 }
 0x898   :  { %v570_v13 = vpop.f32.mrf.mxu3 }
 0x899   :  { %581 = vst.msk [vmem:[%s940_s10 + $0x38] sm:$0xff] %vm573_vm2, %v570_v13 }
 0x89a   :  { %590 = vsyncpa [#allocation3], 1 }
 0x89b   :  { %591 = vsyncpa [#allocation6], 1 }
 0x89c   :  { %592 = vsyncpa [#allocation4], 1 }

</bundles_post_ra>
